<compile_context>
chip_gen: v7x
topology: tpu7x:2x2x1
jax: 0.10.0
libtpu: 0.0.40
codegen_flags: <defaults>
</compile_context>

<pallas_src>
import functools

import jax
import jax.numpy as jnp
from jax.experimental import pallas as pl
from jax.experimental.pallas import tpu as pltpu  # noqa: F401  (TPU backend)


def _permute_kernel(x_ref, o_ref, *, num_heads):
    # x_ref: (H, S, D)   o_ref: (S, H*D)
    # Build one lane-dense (S, H*D) slab: head h occupies lanes [h*D, (h+1)*D),
    # which is exactly the row-major flattening of (S, H, D).
    o_ref[...] = jnp.concatenate(
        [x_ref[h] for h in range(num_heads)], axis=-1
    )


def permute_0213(x):
    """Equivalent of torch: x.permute(0, 2, 1, 3) for x of shape (1, H, S, D)."""
    B, H, S, D = x.shape
    assert B == 1, "module is defined for batch size 1"

    x3 = x.reshape(H, S, D)  # free view: drop the size-1 batch dim

    out = pl.pallas_call(
        functools.partial(_permute_kernel, num_heads=H),
        out_shape=jax.ShapeDtypeStruct((S, H * D), x.dtype),
        # Single invocation (no grid): whole tensor fits comfortably in VMEM
        # (~768 KiB total in+out), so skip pipeline/per-step overhead.
        in_specs=[pl.BlockSpec((H, S, D), lambda: (0, 0, 0))],
        out_specs=pl.BlockSpec((S, H * D), lambda: (0, 0)),
        cost_estimate=pl.CostEstimate(
            flops=0,
            transcendentals=0,
            bytes_accessed=2 * H * S * D * x.dtype.itemsize,
        ),
    )(x3)

    # Reshape metadata only: (S, H*D) -> (B, S, H, D)
    return out.reshape(B, S, H, D)


if __name__ == "__main__":
    key = jax.random.PRNGKey(0)
    # Shape taken directly from the module's example input: [1, 4, 384, 64]
    x = jax.random.normal(key, (1, 4, 384, 64), dtype=jnp.float32)

    y = jax.block_until_ready(permute_0213(x))

    # Reference semantics check against plain JAX transpose.
    y_ref = jnp.transpose(x, (0, 2, 1, 3))
    assert y.shape == (1, 384, 4, 64), y.shape
    assert y.dtype == x.dtype
    assert jnp.array_equal(y, y_ref), "mismatch vs reference permute"

    print("KERNEL_OK")
</pallas_src>

<mosaic_0001>
module attributes {stable_mosaic.version = 11 : i64} {
  func.func @_permute_kernel(%arg0: memref<4x384x64xf32, #tpu.memory_space<vmem>>, %arg1: memref<384x256xf32, #tpu.memory_space<vmem>>) attributes {dimension_semantics = [], scalar_prefetch = 0 : i64, scratch_operands = 0 : i64, tpu.core_type = #tpu.core_type<tc>} {
    %c0 = arith.constant 0 : index
    %c0_0 = arith.constant 0 : index
    %c0_1 = arith.constant 0 : index
    %0 = vector.load %arg0[%c0, %c0_0, %c0_1] : memref<4x384x64xf32, #tpu.memory_space<vmem>>, vector<1x384x64xf32>
    %1 = vector.shape_cast %0 : vector<1x384x64xf32> to vector<384x64xf32>
    %c1 = arith.constant 1 : index
    %c0_2 = arith.constant 0 : index
    %c0_3 = arith.constant 0 : index
    %2 = vector.load %arg0[%c1, %c0_2, %c0_3] : memref<4x384x64xf32, #tpu.memory_space<vmem>>, vector<1x384x64xf32>
    %3 = vector.shape_cast %2 : vector<1x384x64xf32> to vector<384x64xf32>
    %c2 = arith.constant 2 : index
    %c0_4 = arith.constant 0 : index
    %c0_5 = arith.constant 0 : index
    %4 = vector.load %arg0[%c2, %c0_4, %c0_5] : memref<4x384x64xf32, #tpu.memory_space<vmem>>, vector<1x384x64xf32>
    %5 = vector.shape_cast %4 : vector<1x384x64xf32> to vector<384x64xf32>
    %c3 = arith.constant 3 : index
    %c0_6 = arith.constant 0 : index
    %c0_7 = arith.constant 0 : index
    %6 = vector.load %arg0[%c3, %c0_6, %c0_7] : memref<4x384x64xf32, #tpu.memory_space<vmem>>, vector<1x384x64xf32>
    %7 = vector.shape_cast %6 : vector<1x384x64xf32> to vector<384x64xf32>
    %8 = tpu.concatenate %1, %3, %5, %7 in 1 : vector<384x64xf32>, vector<384x64xf32>, vector<384x64xf32>, vector<384x64xf32> -> vector<384x256xf32>
    %c0_8 = arith.constant 0 : index
    %c0_9 = arith.constant 0 : index
    %9 = vector.load %arg1[%c0_8, %c0_9] : memref<384x256xf32, #tpu.memory_space<vmem>>, vector<384x256xf32>
    tpu.vector_store %arg1[%c0_8, %c0_9], %8 {strides = array<i32>} : memref<384x256xf32, #tpu.memory_space<vmem>>, vector<384x256xf32>,
    return
  }
}

</mosaic_0001>

<bundles_post_ra>
// kernel: tpu_custom_call.1
= control target key start
LH: loop header
LB: loop body
LE: loop exit
PB: predicated region body
PF: predicated region fallthrough
CT: control target
= control target key end

     0   :  { %s969_s10 = smov 64   ;;  %s1763_s0 = inlined_call_operand.vmem [shape: f32[4,384,64], index: 0, kind: input, shape index: {}]   ;;  %s1764_s1 = inlined_call_operand.hbm [shape: f32[384,256], index: 1, kind: output, shape index: {}]  }
   0x1   :  { %v799_v0 = vld [vmem:[%s1763_s0 + $0x190] sm:$0xff]  ;;  %v797_v1 = vld [vmem:[%s1763_s0 + $0x180] sm:$0xff]  ;;  %v800_v2 = vld [vmem:[%s1763_s0 + $0x198] sm:$0xff] }
   0x2   :  { %256 = vrot.lane.b32.xlu1 %v799_v0, %s969_s10  ;;  %252 = vrot.lane.b32.xlu0 %v797_v1, %s969_s10  ;;  %v798_v3 = vld [vmem:[%s1763_s0 + $0x188] sm:$0xff]  ;;  %v801_v5 = vld [vmem:[%s1763_s0 + $0x1a0] sm:$0xff] }
   0x3   :  { %v802_v4 = vld [vmem:[%s1763_s0 + $0x1a8] sm:$0xff]  ;;  %v804_v6 = vld [vmem:[%s1763_s0 + $0x1b8] sm:$0xff]  ;;  %v803_v7 = vld [vmem:[%s1763_s0 + $0x1b0] sm:$0xff] }
   0x4   :  { %v806_v8 = vld [vmem:[%s1763_s0 + $0x1c8] sm:$0xff]  ;;  %v805_v9 = vld [vmem:[%s1763_s0 + $0x1c0] sm:$0xff]  ;;  %v808_v10 = vld [vmem:[%s1763_s0 + $0x1d8] sm:$0xff] }
   0x5   :  { %v807_v11 = vld [vmem:[%s1763_s0 + $0x1d0] sm:$0xff]  ;;  %v810_v12 = vld [vmem:[%s1763_s0 + $0x1e8] sm:$0xff]  ;;  %v809_v13 = vld [vmem:[%s1763_s0 + $0x1e0] sm:$0xff] }
   0x6   :  { %258 = vrot.lane.b32.xlu1 %v800_v2, %s969_s10  ;;  %254 = vrot.lane.b32.xlu0 %v798_v3, %s969_s10  ;;  %v812_v14 = vld [vmem:[%s1763_s0 + $0x1f8] sm:$0xff]  ;;  %v811_v15 = vld [vmem:[%s1763_s0 + $0x1f0] sm:$0xff] }
   0x7   :  { %v814_v16 = vld [vmem:[%s1763_s0 + $0x208] sm:$0xff]  ;;  %v813_v17 = vld [vmem:[%s1763_s0 + $0x200] sm:$0xff]  ;;  %v816_v18 = vld [vmem:[%s1763_s0 + $0x218] sm:$0xff] }
   0x8   :  { %v815_v19 = vld [vmem:[%s1763_s0 + $0x210] sm:$0xff]  ;;  %v818_v20 = vld [vmem:[%s1763_s0 + $0x228] sm:$0xff]  ;;  %v817_v21 = vld [vmem:[%s1763_s0 + $0x220] sm:$0xff] }
   0xa   :  { %262 = vrot.lane.b32.xlu1 %v802_v4, %s969_s10  ;;  %260 = vrot.lane.b32.xlu0 %v801_v5, %s969_s10 }
   0xe   :  { %266 = vrot.lane.b32.xlu1 %v804_v6, %s969_s10  ;;  %264 = vrot.lane.b32.xlu0 %v803_v7, %s969_s10 }
  0x12   :  { %270 = vrot.lane.b32.xlu1 %v806_v8, %s969_s10  ;;  %268 = vrot.lane.b32.xlu0 %v805_v9, %s969_s10 }
  0x16   :  { %274 = vrot.lane.b32.xlu1 %v808_v10, %s969_s10  ;;  %272 = vrot.lane.b32.xlu0 %v807_v11, %s969_s10 }
  0x1a   :  { %278 = vrot.lane.b32.xlu1 %v810_v12, %s969_s10  ;;  %276 = vrot.lane.b32.xlu0 %v809_v13, %s969_s10 }
  0x1e   :  { %282 = vrot.lane.b32.xlu1 %v812_v14, %s969_s10  ;;  %280 = vrot.lane.b32.xlu0 %v811_v15, %s969_s10 }
  0x22   :  { %286 = vrot.lane.b32.xlu1 %v814_v16, %s969_s10  ;;  %284 = vrot.lane.b32.xlu0 %v813_v17, %s969_s10 }
  0x26   :  { %290 = vrot.lane.b32.xlu1 %v816_v18, %s969_s10  ;;  %288 = vrot.lane.b32.xlu0 %v815_v19, %s969_s10 }
  0x2a   :  { %294 = vrot.lane.b32.xlu1 %v818_v20, %s969_s10  ;;  %292 = vrot.lane.b32.xlu0 %v817_v21, %s969_s10 }
  0x2b   :  { %6 = vsyncpa [#allocation3], 0  ;;  %v820_v22 = vld [vmem:[%s1763_s0 + $0x238] sm:$0xff]  ;;  %v819_v23 = vld [vmem:[%s1763_s0 + $0x230] sm:$0xff]  ;;  %vm588_vm0 = vcmask 523264   ;;  %s970_s19 = smov [#allocation2]  }
  0x2c   :  { %v822_v24 = vld [vmem:[%s1763_s0 + $0x248] sm:$0xff]  ;;  %v821_v25 = vld [vmem:[%s1763_s0 + $0x240] sm:$0xff]  ;;  %v824_v26 = vld [vmem:[%s1763_s0 + $0x258] sm:$0xff]  ;;  %s786_s20 = sshll.u32 %s970_s19, 4  ;;  %s787_s20 = int_to_ptr.vmem [resolvable:$true] %s786_s20 }
  0x2d   :  { %v823_v27 = vld [vmem:[%s1763_s0 + $0x250] sm:$0xff]  ;;  %v826_v28 = vld [vmem:[%s1763_s0 + $0x268] sm:$0xff]  ;;  %v825_v29 = vld [vmem:[%s1763_s0 + $0x260] sm:$0xff]  ;;  %s945_s25 = scalar_lea.vmem %s787_s20, 12288  ;;  %p950_p1 = scmp.lt.s32.totalorder %s787_s20, %s787_s20 }
  0x2e   :  { %298 = vrot.lane.b32.xlu1 %v820_v22, %s969_s10  ;;  %296 = vrot.lane.b32.xlu0 %v819_v23, %s969_s10  ;;  %v828_v30 = vld [vmem:[%s1763_s0 + $0x278] sm:$0xff]  ;;  %v827_v31 = vld [vmem:[%s1763_s0 + $0x270] sm:$0xff]  ;;  %p946_p0 = scmp.ne.s32.totalorder %s787_s20, %s945_s25  ;;  %p951_p2 = scmp.lt.s32.totalorder %s945_s25, %s945_s25 }
  0x2f   :  { %v830_v32 = vld [vmem:[%s1763_s0 + $0x288] sm:$0xff]  ;;  %v829_v33 = vld [vmem:[%s1763_s0 + $0x280] sm:$0xff]  ;;  %v832_v34 = vld [vmem:[%s1763_s0 + $0x298] sm:$0xff] }
  0x30   :  { %v831_v35 = vld [vmem:[%s1763_s0 + $0x290] sm:$0xff]  ;;  %v834_v36 = vld [vmem:[%s1763_s0 + $0x2a8] sm:$0xff]  ;;  %v833_v37 = vld [vmem:[%s1763_s0 + $0x2a0] sm:$0xff]  ;;  %p952_p3 = por %p951_p2, %p950_p1 }
  0x31   :  { %v836_v38 = vld [vmem:[%s1763_s0 + $0x2b8] sm:$0xff]  ;;  %v835_v39 = vld [vmem:[%s1763_s0 + $0x2b0] sm:$0xff]  ;;  %v838_v40 = vld [vmem:[%s1763_s0 + $0x2c8] sm:$0xff] }
  0x32   :  { %302 = vrot.lane.b32.xlu1 %v822_v24, %s969_s10  ;;  %300 = vrot.lane.b32.xlu0 %v821_v25, %s969_s10  ;;  %v837_v41 = vld [vmem:[%s1763_s0 + $0x2c0] sm:$0xff]  ;;  %v840_v42 = vld [vmem:[%s1763_s0 + $0x2d8] sm:$0xff]  ;;  %p953_p4 = pnand %p952_p3, %p946_p0 }
  0x33   :  { %v839_v43 = vld [vmem:[%s1763_s0 + $0x2d0] sm:$0xff]  ;;  %v842_v44 = vld [vmem:[%s1763_s0 + $0x2e8] sm:$0xff]  ;;  %v841_v45 = vld [vmem:[%s1763_s0 + $0x2e0] sm:$0xff] }
  0x34   :  { %v844_v46 = vld [vmem:[%s1763_s0 + $0x2f8] sm:$0xff]  ;;  %v843_v47 = vld [vmem:[%s1763_s0 + $0x2f0] sm:$0xff]  ;;  %v894_v48 = vld [vmem:[%s1763_s0 + $0x488] sm:$0xff] }
  0x35   :  { %v893_v49 = vld [vmem:[%s1763_s0 + $0x480] sm:$0xff]  ;;  %v896_v50 = vld [vmem:[%s1763_s0 + $0x498] sm:$0xff]  ;;  %v895_v51 = vld [vmem:[%s1763_s0 + $0x490] sm:$0xff] }
  0x36   :  { %306 = vrot.lane.b32.xlu1 %v824_v26, %s969_s10  ;;  %304 = vrot.lane.b32.xlu0 %v823_v27, %s969_s10  ;;  %v898_v52 = vld [vmem:[%s1763_s0 + $0x4a8] sm:$0xff]  ;;  %v897_v53 = vld [vmem:[%s1763_s0 + $0x4a0] sm:$0xff] }
  0x37   :  { %v900_v54 = vld [vmem:[%s1763_s0 + $0x4b8] sm:$0xff]  ;;  %v899_v55 = vld [vmem:[%s1763_s0 + $0x4b0] sm:$0xff]  ;;  %v902_v56 = vld [vmem:[%s1763_s0 + $0x4c8] sm:$0xff] }
  0x38   :  { %v901_v57 = vld [vmem:[%s1763_s0 + $0x4c0] sm:$0xff]  ;;  %v11_v58 = vld [vmem:[%s1763_s0 + $0x10] sm:$0xff]  ;;  %v904_v60 = vld [vmem:[%s1763_s0 + $0x4d8] sm:$0xff] }
  0x39   :  { %v9_v59 = vld [vmem:[%s1763_s0] sm:$0xff]  ;;  %v903_v61 = vld [vmem:[%s1763_s0 + $0x4d0] sm:$0xff]  ;;  %v12_v2 = vld [vmem:[%s1763_s0 + $0x18] sm:$0xff] }
  0x3a   :  { %310 = vrot.lane.b32.xlu1 %v826_v28, %s969_s10  ;;  %308 = vrot.lane.b32.xlu0 %v825_v29, %s969_s10  ;;  %v10_v3 = vld [vmem:[%s1763_s0 + $0x8] sm:$0xff]  ;;  %v905_v5 = vld [vmem:[%s1763_s0 + $0x4e0] sm:$0xff] }
  0x3b   :  { %v906_v4 = vld [vmem:[%s1763_s0 + $0x4e8] sm:$0xff]  ;;  %v13_v11 = vld [vmem:[%s1763_s0 + $0x20] sm:$0xff]  ;;  %v908_v12 = vld [vmem:[%s1763_s0 + $0x4f8] sm:$0xff] }
  0x3c   :  { %v14_v10 = vld [vmem:[%s1763_s0 + $0x28] sm:$0xff]  ;;  %v907_v13 = vld [vmem:[%s1763_s0 + $0x4f0] sm:$0xff]  ;;  %v16_v18 = vld [vmem:[%s1763_s0 + $0x38] sm:$0xff] }
  0x3d   :  { %v15_v19 = vld [vmem:[%s1763_s0 + $0x30] sm:$0xff]  ;;  %v910_v20 = vld [vmem:[%s1763_s0 + $0x508] sm:$0xff]  ;;  %v909_v21 = vld [vmem:[%s1763_s0 + $0x500] sm:$0xff] }
  0x3e   :  { %314 = vrot.lane.b32.xlu1 %v828_v30, %s969_s10  ;;  %312 = vrot.lane.b32.xlu0 %v827_v31, %s969_s10  ;;  %v18_v26 = vld [vmem:[%s1763_s0 + $0x48] sm:$0xff]  ;;  %v17_v27 = vld [vmem:[%s1763_s0 + $0x40] sm:$0xff] }
  0x3f   :  { %v912_v28 = vld [vmem:[%s1763_s0 + $0x518] sm:$0xff]  ;;  %v911_v29 = vld [vmem:[%s1763_s0 + $0x510] sm:$0xff] }
  0x42   :  { %318 = vrot.lane.b32.xlu1 %v830_v32, %s969_s10  ;;  %316 = vrot.lane.b32.xlu0 %v829_v33, %s969_s10 }
  0x46   :  { %322 = vrot.lane.b32.xlu1 %v832_v34, %s969_s10  ;;  %320 = vrot.lane.b32.xlu0 %v831_v35, %s969_s10  ;;  %v20_v34 = vld [vmem:[%s1763_s0 + $0x58] sm:$0xff]  ;;  %v19_v35 = vld [vmem:[%s1763_s0 + $0x50] sm:$0xff] }
  0x4a   :  { %326 = vrot.lane.b32.xlu1 %v834_v36, %s969_s10  ;;  %324 = vrot.lane.b32.xlu0 %v833_v37, %s969_s10  ;;  %v914_v36 = vld [vmem:[%s1763_s0 + $0x528] sm:$0xff]  ;;  %v913_v37 = vld [vmem:[%s1763_s0 + $0x520] sm:$0xff] }
  0x4e   :  { %330 = vrot.lane.b32.xlu1 %v836_v38, %s969_s10  ;;  %328 = vrot.lane.b32.xlu0 %v835_v39, %s969_s10 }
  0x52   :  { %334 = vrot.lane.b32.xlu1 %v838_v40, %s969_s10  ;;  %332 = vrot.lane.b32.xlu0 %v837_v41, %s969_s10 }
  0x56   :  { %338 = vrot.lane.b32.xlu1 %v840_v42, %s969_s10  ;;  %336 = vrot.lane.b32.xlu0 %v839_v43, %s969_s10  ;;  %v22_v42 = vld [vmem:[%s1763_s0 + $0x68] sm:$0xff]  ;;  %v21_v43 = vld [vmem:[%s1763_s0 + $0x60] sm:$0xff] }
  0x5a   :  { %342 = vrot.lane.b32.xlu1 %v842_v44, %s969_s10  ;;  %340 = vrot.lane.b32.xlu0 %v841_v45, %s969_s10  ;;  %v916_v44 = vld [vmem:[%s1763_s0 + $0x538] sm:$0xff]  ;;  %v915_v45 = vld [vmem:[%s1763_s0 + $0x530] sm:$0xff] }
  0x5e   :  { %346 = vrot.lane.b32.xlu1 %v844_v46, %s969_s10  ;;  %344 = vrot.lane.b32.xlu0 %v843_v47, %s969_s10 }
  0x62   :  { %446 = vrot.lane.b32.xlu1 %v894_v48, %s969_s10  ;;  %444 = vrot.lane.b32.xlu0 %v893_v49, %s969_s10 }
  0x66   :  { %450 = vrot.lane.b32.xlu1 %v896_v50, %s969_s10  ;;  %448 = vrot.lane.b32.xlu0 %v895_v51, %s969_s10  ;;  %v24_v50 = vld [vmem:[%s1763_s0 + $0x78] sm:$0xff]  ;;  %v23_v51 = vld [vmem:[%s1763_s0 + $0x70] sm:$0xff] }
  0x6a   :  { %454 = vrot.lane.b32.xlu1 %v898_v52, %s969_s10  ;;  %452 = vrot.lane.b32.xlu0 %v897_v53, %s969_s10  ;;  %v918_v52 = vld [vmem:[%s1763_s0 + $0x548] sm:$0xff]  ;;  %v917_v53 = vld [vmem:[%s1763_s0 + $0x540] sm:$0xff] }
  0x6e   :  { %458 = vrot.lane.b32.xlu1 %v900_v54, %s969_s10  ;;  %456 = vrot.lane.b32.xlu0 %v899_v55, %s969_s10 }
  0x72   :  { %462 = vrot.lane.b32.xlu1 %v902_v56, %s969_s10  ;;  %460 = vrot.lane.b32.xlu0 %v901_v57, %s969_s10 }
  0x74   :  { %v257_v62 = vpop.permute.xlu1 %256  ;;  %v253_v63 = vpop.permute.xlu0 %252 }
  0x75   :  { %v591_v0 = vsel %vm588_vm0, %v11_v58, %v257_v62  ;;  %v589_v1 = vsel %vm588_vm0, %v9_v59, %v253_v63  ;;  %v26_v58 = vld [vmem:[%s1763_s0 + $0x88] sm:$0xff]  ;;  %v25_v59 = vld [vmem:[%s1763_s0 + $0x80] sm:$0xff] }
  0x76   :  { %689 = vst [vmem:[#allocation2 + $0x20] sm:$0xff] %v591_v0  ;;  %685 = vst [vmem:[#allocation2] sm:$0xff] %v589_v1  ;;  %466 = vrot.lane.b32.xlu1 %v904_v60, %s969_s10  ;;  %464 = vrot.lane.b32.xlu0 %v903_v61, %s969_s10  ;;  %v920_v60 = vld [vmem:[%s1763_s0 + $0x558] sm:$0xff]  ;;  %v919_v61 = vld [vmem:[%s1763_s0 + $0x550] sm:$0xff] }
  0x78   :  { %v259_v6 = vpop.permute.xlu1 %258  ;;  %v255_v7 = vpop.permute.xlu0 %254 }
  0x79   :  { %v592_v8 = vsel %vm588_vm0, %v12_v2, %v259_v6  ;;  %v590_v9 = vsel %vm588_vm0, %v10_v3, %v255_v7  ;;  %v28_v2 = vld [vmem:[%s1763_s0 + $0x98] sm:$0xff]  ;;  %v27_v3 = vld [vmem:[%s1763_s0 + $0x90] sm:$0xff] }
  0x7a   :  { %691 = vst [vmem:[#allocation2 + $0x30] sm:$0xff] %v592_v8  ;;  %687 = vst [vmem:[#allocation2 + $0x10] sm:$0xff] %v590_v9  ;;  %470 = vrot.lane.b32.xlu1 %v906_v4, %s969_s10  ;;  %468 = vrot.lane.b32.xlu0 %v905_v5, %s969_s10  ;;  %v922_v4 = vld [vmem:[%s1763_s0 + $0x568] sm:$0xff]  ;;  %v921_v5 = vld [vmem:[%s1763_s0 + $0x560] sm:$0xff] }
  0x7c   :  { %v263_v14 = vpop.permute.xlu1 %262  ;;  %v261_v15 = vpop.permute.xlu0 %260 }
  0x7d   :  { %v594_v16 = vsel %vm588_vm0, %v14_v10, %v263_v14  ;;  %v593_v17 = vsel %vm588_vm0, %v13_v11, %v261_v15  ;;  %v30_v10 = vld [vmem:[%s1763_s0 + $0xa8] sm:$0xff]  ;;  %v29_v11 = vld [vmem:[%s1763_s0 + $0xa0] sm:$0xff] }
  0x7e   :  { %695 = vst [vmem:[#allocation2 + $0x50] sm:$0xff] %v594_v16  ;;  %693 = vst [vmem:[#allocation2 + $0x40] sm:$0xff] %v593_v17  ;;  %474 = vrot.lane.b32.xlu1 %v908_v12, %s969_s10  ;;  %472 = vrot.lane.b32.xlu0 %v907_v13, %s969_s10  ;;  %v924_v12 = vld [vmem:[%s1763_s0 + $0x578] sm:$0xff]  ;;  %v923_v13 = vld [vmem:[%s1763_s0 + $0x570] sm:$0xff] }
  0x80   :  { %v267_v22 = vpop.permute.xlu1 %266  ;;  %v265_v23 = vpop.permute.xlu0 %264 }
  0x81   :  { %v596_v24 = vsel %vm588_vm0, %v16_v18, %v267_v22  ;;  %v595_v25 = vsel %vm588_vm0, %v15_v19, %v265_v23  ;;  %v32_v18 = vld [vmem:[%s1763_s0 + $0xb8] sm:$0xff]  ;;  %v31_v19 = vld [vmem:[%s1763_s0 + $0xb0] sm:$0xff] }
  0x82   :  { %699 = vst [vmem:[#allocation2 + $0x70] sm:$0xff] %v596_v24  ;;  %697 = vst [vmem:[#allocation2 + $0x60] sm:$0xff] %v595_v25  ;;  %478 = vrot.lane.b32.xlu1 %v910_v20, %s969_s10  ;;  %476 = vrot.lane.b32.xlu0 %v909_v21, %s969_s10  ;;  %v926_v20 = vld [vmem:[%s1763_s0 + $0x588] sm:$0xff]  ;;  %v925_v21 = vld [vmem:[%s1763_s0 + $0x580] sm:$0xff] }
  0x84   :  { %v271_v30 = vpop.permute.xlu1 %270  ;;  %v269_v31 = vpop.permute.xlu0 %268 }
  0x85   :  { %v598_v32 = vsel %vm588_vm0, %v18_v26, %v271_v30  ;;  %v597_v33 = vsel %vm588_vm0, %v17_v27, %v269_v31  ;;  %v34_v26 = vld [vmem:[%s1763_s0 + $0xc8] sm:$0xff]  ;;  %v33_v27 = vld [vmem:[%s1763_s0 + $0xc0] sm:$0xff] }
  0x86   :  { %703 = vst [vmem:[#allocation2 + $0x90] sm:$0xff] %v598_v32  ;;  %701 = vst [vmem:[#allocation2 + $0x80] sm:$0xff] %v597_v33  ;;  %482 = vrot.lane.b32.xlu1 %v912_v28, %s969_s10  ;;  %480 = vrot.lane.b32.xlu0 %v911_v29, %s969_s10  ;;  %v928_v28 = vld [vmem:[%s1763_s0 + $0x598] sm:$0xff]  ;;  %v927_v29 = vld [vmem:[%s1763_s0 + $0x590] sm:$0xff] }
  0x88   :  { %v275_v38 = vpop.permute.xlu1 %274  ;;  %v273_v39 = vpop.permute.xlu0 %272 }
  0x89   :  { %v600_v40 = vsel %vm588_vm0, %v20_v34, %v275_v38  ;;  %v599_v41 = vsel %vm588_vm0, %v19_v35, %v273_v39  ;;  %v36_v34 = vld [vmem:[%s1763_s0 + $0xd8] sm:$0xff]  ;;  %v35_v35 = vld [vmem:[%s1763_s0 + $0xd0] sm:$0xff] }
  0x8a   :  { %707 = vst [vmem:[#allocation2 + $0xb0] sm:$0xff] %v600_v40  ;;  %705 = vst [vmem:[#allocation2 + $0xa0] sm:$0xff] %v599_v41  ;;  %486 = vrot.lane.b32.xlu1 %v914_v36, %s969_s10  ;;  %484 = vrot.lane.b32.xlu0 %v913_v37, %s969_s10  ;;  %v930_v36 = vld [vmem:[%s1763_s0 + $0x5a8] sm:$0xff]  ;;  %v929_v37 = vld [vmem:[%s1763_s0 + $0x5a0] sm:$0xff] }
  0x8c   :  { %v279_v46 = vpop.permute.xlu1 %278  ;;  %v277_v47 = vpop.permute.xlu0 %276 }
  0x8d   :  { %v602_v48 = vsel %vm588_vm0, %v22_v42, %v279_v46  ;;  %v601_v49 = vsel %vm588_vm0, %v21_v43, %v277_v47  ;;  %v38_v42 = vld [vmem:[%s1763_s0 + $0xe8] sm:$0xff]  ;;  %v37_v43 = vld [vmem:[%s1763_s0 + $0xe0] sm:$0xff] }
  0x8e   :  { %711 = vst [vmem:[#allocation2 + $0xd0] sm:$0xff] %v602_v48  ;;  %709 = vst [vmem:[#allocation2 + $0xc0] sm:$0xff] %v601_v49  ;;  %490 = vrot.lane.b32.xlu1 %v916_v44, %s969_s10  ;;  %488 = vrot.lane.b32.xlu0 %v915_v45, %s969_s10  ;;  %v932_v44 = vld [vmem:[%s1763_s0 + $0x5b8] sm:$0xff]  ;;  %v931_v45 = vld [vmem:[%s1763_s0 + $0x5b0] sm:$0xff] }
  0x90   :  { %v283_v54 = vpop.permute.xlu1 %282  ;;  %v281_v55 = vpop.permute.xlu0 %280 }
  0x91   :  { %v604_v56 = vsel %vm588_vm0, %v24_v50, %v283_v54  ;;  %v603_v57 = vsel %vm588_vm0, %v23_v51, %v281_v55  ;;  %v40_v50 = vld [vmem:[%s1763_s0 + $0xf8] sm:$0xff]  ;;  %v39_v51 = vld [vmem:[%s1763_s0 + $0xf0] sm:$0xff] }
  0x92   :  { %715 = vst [vmem:[#allocation2 + $0xf0] sm:$0xff] %v604_v56  ;;  %713 = vst [vmem:[#allocation2 + $0xe0] sm:$0xff] %v603_v57  ;;  %494 = vrot.lane.b32.xlu1 %v918_v52, %s969_s10  ;;  %492 = vrot.lane.b32.xlu0 %v917_v53, %s969_s10  ;;  %v934_v52 = vld [vmem:[%s1763_s0 + $0x5c8] sm:$0xff]  ;;  %v933_v53 = vld [vmem:[%s1763_s0 + $0x5c0] sm:$0xff] }
  0x94   :  { %v287_v62 = vpop.permute.xlu1 %286  ;;  %v285_v63 = vpop.permute.xlu0 %284 }
  0x95   :  { %v606_v0 = vsel %vm588_vm0, %v26_v58, %v287_v62  ;;  %v605_v1 = vsel %vm588_vm0, %v25_v59, %v285_v63  ;;  %v42_v58 = vld [vmem:[%s1763_s0 + $0x108] sm:$0xff]  ;;  %v41_v59 = vld [vmem:[%s1763_s0 + $0x100] sm:$0xff] }
  0x96   :  { %719 = vst [vmem:[#allocation2 + $0x110] sm:$0xff] %v606_v0  ;;  %717 = vst [vmem:[#allocation2 + $0x100] sm:$0xff] %v605_v1  ;;  %498 = vrot.lane.b32.xlu1 %v920_v60, %s969_s10  ;;  %496 = vrot.lane.b32.xlu0 %v919_v61, %s969_s10  ;;  %v936_v60 = vld [vmem:[%s1763_s0 + $0x5d8] sm:$0xff]  ;;  %v935_v61 = vld [vmem:[%s1763_s0 + $0x5d0] sm:$0xff] }
  0x98   :  { %v291_v6 = vpop.permute.xlu1 %290  ;;  %v289_v7 = vpop.permute.xlu0 %288 }
  0x99   :  { %v608_v8 = vsel %vm588_vm0, %v28_v2, %v291_v6  ;;  %v607_v9 = vsel %vm588_vm0, %v27_v3, %v289_v7  ;;  %v44_v2 = vld [vmem:[%s1763_s0 + $0x118] sm:$0xff]  ;;  %v43_v3 = vld [vmem:[%s1763_s0 + $0x110] sm:$0xff] }
  0x9a   :  { %723 = vst [vmem:[#allocation2 + $0x130] sm:$0xff] %v608_v8  ;;  %721 = vst [vmem:[#allocation2 + $0x120] sm:$0xff] %v607_v9  ;;  %502 = vrot.lane.b32.xlu1 %v922_v4, %s969_s10  ;;  %500 = vrot.lane.b32.xlu0 %v921_v5, %s969_s10  ;;  %v938_v4 = vld [vmem:[%s1763_s0 + $0x5e8] sm:$0xff]  ;;  %v937_v5 = vld [vmem:[%s1763_s0 + $0x5e0] sm:$0xff] }
  0x9c   :  { %v295_v14 = vpop.permute.xlu1 %294  ;;  %v293_v15 = vpop.permute.xlu0 %292 }
  0x9d   :  { %v610_v16 = vsel %vm588_vm0, %v30_v10, %v295_v14  ;;  %v609_v17 = vsel %vm588_vm0, %v29_v11, %v293_v15  ;;  %v46_v10 = vld [vmem:[%s1763_s0 + $0x128] sm:$0xff]  ;;  %v45_v11 = vld [vmem:[%s1763_s0 + $0x120] sm:$0xff] }
  0x9e   :  { %727 = vst [vmem:[#allocation2 + $0x150] sm:$0xff] %v610_v16  ;;  %725 = vst [vmem:[#allocation2 + $0x140] sm:$0xff] %v609_v17  ;;  %506 = vrot.lane.b32.xlu1 %v924_v12, %s969_s10  ;;  %504 = vrot.lane.b32.xlu0 %v923_v13, %s969_s10  ;;  %v940_v12 = vld [vmem:[%s1763_s0 + $0x5f8] sm:$0xff]  ;;  %v939_v13 = vld [vmem:[%s1763_s0 + $0x5f0] sm:$0xff] }
  0xa0   :  { %v299_v22 = vpop.permute.xlu1 %298  ;;  %v297_v23 = vpop.permute.xlu0 %296 }
  0xa1   :  { %v612_v24 = vsel %vm588_vm0, %v32_v18, %v299_v22  ;;  %v611_v25 = vsel %vm588_vm0, %v31_v19, %v297_v23  ;;  %v48_v18 = vld [vmem:[%s1763_s0 + $0x138] sm:$0xff]  ;;  %v47_v19 = vld [vmem:[%s1763_s0 + $0x130] sm:$0xff] }
  0xa2   :  { %731 = vst [vmem:[#allocation2 + $0x170] sm:$0xff] %v612_v24  ;;  %729 = vst [vmem:[#allocation2 + $0x160] sm:$0xff] %v611_v25  ;;  %510 = vrot.lane.b32.xlu1 %v926_v20, %s969_s10  ;;  %508 = vrot.lane.b32.xlu0 %v925_v21, %s969_s10  ;;  %v50_v24 = vld [vmem:[%s1763_s0 + $0x148] sm:$0xff]  ;;  %v49_v25 = vld [vmem:[%s1763_s0 + $0x140] sm:$0xff] }
  0xa4   :  { %v303_v30 = vpop.permute.xlu1 %302  ;;  %v301_v31 = vpop.permute.xlu0 %300 }
  0xa5   :  { %v614_v32 = vsel %vm588_vm0, %v34_v26, %v303_v30  ;;  %v613_v33 = vsel %vm588_vm0, %v33_v27, %v301_v31  ;;  %v52_v30 = vld [vmem:[%s1763_s0 + $0x158] sm:$0xff]  ;;  %v51_v31 = vld [vmem:[%s1763_s0 + $0x150] sm:$0xff] }
  0xa6   :  { %735 = vst [vmem:[#allocation2 + $0x190] sm:$0xff] %v614_v32  ;;  %733 = vst [vmem:[#allocation2 + $0x180] sm:$0xff] %v613_v33  ;;  %514 = vrot.lane.b32.xlu1 %v928_v28, %s969_s10  ;;  %512 = vrot.lane.b32.xlu0 %v927_v29, %s969_s10 }
  0xa8   :  { %v307_v38 = vpop.permute.xlu1 %306  ;;  %v305_v39 = vpop.permute.xlu0 %304 }
  0xa9   :  { %v616_v40 = vsel %vm588_vm0, %v36_v34, %v307_v38  ;;  %v615_v41 = vsel %vm588_vm0, %v35_v35, %v305_v39 }
  0xaa   :  { %739 = vst [vmem:[#allocation2 + $0x1b0] sm:$0xff] %v616_v40  ;;  %737 = vst [vmem:[#allocation2 + $0x1a0] sm:$0xff] %v615_v41  ;;  %518 = vrot.lane.b32.xlu1 %v930_v36, %s969_s10  ;;  %516 = vrot.lane.b32.xlu0 %v929_v37, %s969_s10  ;;  %v54_v36 = vld [vmem:[%s1763_s0 + $0x168] sm:$0xff]  ;;  %v53_v37 = vld [vmem:[%s1763_s0 + $0x160] sm:$0xff] }
  0xac   :  { %v311_v46 = vpop.permute.xlu1 %310  ;;  %v309_v47 = vpop.permute.xlu0 %308 }
  0xad   :  { %v618_v48 = vsel %vm588_vm0, %v38_v42, %v311_v46  ;;  %v617_v49 = vsel %vm588_vm0, %v37_v43, %v309_v47  ;;  %v56_v42 = vld [vmem:[%s1763_s0 + $0x178] sm:$0xff]  ;;  %v55_v43 = vld [vmem:[%s1763_s0 + $0x170] sm:$0xff] }
  0xae   :  { %743 = vst [vmem:[#allocation2 + $0x1d0] sm:$0xff] %v618_v48  ;;  %741 = vst [vmem:[#allocation2 + $0x1c0] sm:$0xff] %v617_v49  ;;  %522 = vrot.lane.b32.xlu1 %v932_v44, %s969_s10  ;;  %520 = vrot.lane.b32.xlu0 %v931_v45, %s969_s10  ;;  %v846_v48 = vld [vmem:[%s1763_s0 + $0x308] sm:$0xff]  ;;  %v845_v49 = vld [vmem:[%s1763_s0 + $0x300] sm:$0xff] }
  0xb0   :  { %v315_v54 = vpop.permute.xlu1 %314  ;;  %v313_v55 = vpop.permute.xlu0 %312 }
  0xb1   :  { %v620_v56 = vsel %vm588_vm0, %v40_v50, %v315_v54  ;;  %v619_v57 = vsel %vm588_vm0, %v39_v51, %v313_v55  ;;  %v848_v54 = vld [vmem:[%s1763_s0 + $0x318] sm:$0xff]  ;;  %v847_v55 = vld [vmem:[%s1763_s0 + $0x310] sm:$0xff] }
  0xb2   :  { %747 = vst [vmem:[#allocation2 + $0x1f0] sm:$0xff] %v620_v56  ;;  %745 = vst [vmem:[#allocation2 + $0x1e0] sm:$0xff] %v619_v57  ;;  %526 = vrot.lane.b32.xlu1 %v934_v52, %s969_s10  ;;  %524 = vrot.lane.b32.xlu0 %v933_v53, %s969_s10 }
  0xb4   :  { %v319_v62 = vpop.permute.xlu1 %318  ;;  %v317_v63 = vpop.permute.xlu0 %316 }
  0xb5   :  { %v622_v0 = vsel %vm588_vm0, %v42_v58, %v319_v62  ;;  %v621_v1 = vsel %vm588_vm0, %v41_v59, %v317_v63 }
  0xb6   :  { %751 = vst [vmem:[#allocation2 + $0x210] sm:$0xff] %v622_v0  ;;  %749 = vst [vmem:[#allocation2 + $0x200] sm:$0xff] %v621_v1  ;;  %530 = vrot.lane.b32.xlu1 %v936_v60, %s969_s10  ;;  %528 = vrot.lane.b32.xlu0 %v935_v61, %s969_s10  ;;  %v850_v60 = vld [vmem:[%s1763_s0 + $0x328] sm:$0xff]  ;;  %v849_v61 = vld [vmem:[%s1763_s0 + $0x320] sm:$0xff] }
  0xb8   :  { %v323_v6 = vpop.permute.xlu1 %322  ;;  %v321_v7 = vpop.permute.xlu0 %320 }
  0xb9   :  { %v624_v8 = vsel %vm588_vm0, %v44_v2, %v323_v6  ;;  %v623_v9 = vsel %vm588_vm0, %v43_v3, %v321_v7  ;;  %v852_v2 = vld [vmem:[%s1763_s0 + $0x338] sm:$0xff]  ;;  %v851_v3 = vld [vmem:[%s1763_s0 + $0x330] sm:$0xff] }
  0xba   :  { %755 = vst [vmem:[#allocation2 + $0x230] sm:$0xff] %v624_v8  ;;  %753 = vst [vmem:[#allocation2 + $0x220] sm:$0xff] %v623_v9  ;;  %534 = vrot.lane.b32.xlu1 %v938_v4, %s969_s10  ;;  %532 = vrot.lane.b32.xlu0 %v937_v5, %s969_s10  ;;  %v854_v8 = vld [vmem:[%s1763_s0 + $0x348] sm:$0xff]  ;;  %v853_v9 = vld [vmem:[%s1763_s0 + $0x340] sm:$0xff] }
  0xbc   :  { %v327_v14 = vpop.permute.xlu1 %326  ;;  %v325_v15 = vpop.permute.xlu0 %324 }
  0xbd   :  { %v626_v16 = vsel %vm588_vm0, %v46_v10, %v327_v14  ;;  %v625_v17 = vsel %vm588_vm0, %v45_v11, %v325_v15  ;;  %v856_v14 = vld [vmem:[%s1763_s0 + $0x358] sm:$0xff]  ;;  %v855_v15 = vld [vmem:[%s1763_s0 + $0x350] sm:$0xff] }
  0xbe   :  { %759 = vst [vmem:[#allocation2 + $0x250] sm:$0xff] %v626_v16  ;;  %757 = vst [vmem:[#allocation2 + $0x240] sm:$0xff] %v625_v17  ;;  %538 = vrot.lane.b32.xlu1 %v940_v12, %s969_s10  ;;  %536 = vrot.lane.b32.xlu0 %v939_v13, %s969_s10 }
  0xc0   :  { %v331_v20 = vpop.permute.xlu1 %330  ;;  %v329_v21 = vpop.permute.xlu0 %328 }
  0xc1   :  { %v628_v22 = vsel %vm588_vm0, %v48_v18, %v331_v20  ;;  %v627_v23 = vsel %vm588_vm0, %v47_v19, %v329_v21  ;;  %v858_v20 = vld [vmem:[%s1763_s0 + $0x368] sm:$0xff]  ;;  %v857_v21 = vld [vmem:[%s1763_s0 + $0x360] sm:$0xff] }
  0xc2   :  { %763 = vst [vmem:[#allocation2 + $0x270] sm:$0xff] %v628_v22  ;;  %761 = vst [vmem:[#allocation2 + $0x260] sm:$0xff] %v627_v23 }
  0xc4   :  { %v335_v26 = vpop.permute.xlu1 %334  ;;  %v333_v27 = vpop.permute.xlu0 %332 }
  0xc5   :  { %v630_v28 = vsel %vm588_vm0, %v50_v24, %v335_v26  ;;  %v629_v29 = vsel %vm588_vm0, %v49_v25, %v333_v27  ;;  %v860_v26 = vld [vmem:[%s1763_s0 + $0x378] sm:$0xff]  ;;  %v859_v27 = vld [vmem:[%s1763_s0 + $0x370] sm:$0xff] }
  0xc6   :  { %767 = vst [vmem:[#allocation2 + $0x290] sm:$0xff] %v630_v28  ;;  %765 = vst [vmem:[#allocation2 + $0x280] sm:$0xff] %v629_v29 }
  0xc8   :  { %v339_v32 = vpop.permute.xlu1 %338  ;;  %v337_v33 = vpop.permute.xlu0 %336 }
  0xc9   :  { %v632_v34 = vsel %vm588_vm0, %v52_v30, %v339_v32  ;;  %v631_v35 = vsel %vm588_vm0, %v51_v31, %v337_v33  ;;  %v862_v32 = vld [vmem:[%s1763_s0 + $0x388] sm:$0xff]  ;;  %v861_v33 = vld [vmem:[%s1763_s0 + $0x380] sm:$0xff] }
  0xca   :  { %771 = vst [vmem:[#allocation2 + $0x2b0] sm:$0xff] %v632_v34  ;;  %769 = vst [vmem:[#allocation2 + $0x2a0] sm:$0xff] %v631_v35 }
  0xcc   :  { %v343_v38 = vpop.permute.xlu1 %342  ;;  %v341_v39 = vpop.permute.xlu0 %340 }
  0xcd   :  { %v634_v40 = vsel %vm588_vm0, %v54_v36, %v343_v38  ;;  %v633_v41 = vsel %vm588_vm0, %v53_v37, %v341_v39  ;;  %v864_v38 = vld [vmem:[%s1763_s0 + $0x398] sm:$0xff]  ;;  %v863_v39 = vld [vmem:[%s1763_s0 + $0x390] sm:$0xff] }
  0xce   :  { %775 = vst [vmem:[#allocation2 + $0x2d0] sm:$0xff] %v634_v40  ;;  %773 = vst [vmem:[#allocation2 + $0x2c0] sm:$0xff] %v633_v41 }
  0xd0   :  { %v347_v44 = vpop.permute.xlu1 %346  ;;  %v345_v45 = vpop.permute.xlu0 %344 }
  0xd1   :  { %v636_v46 = vsel %vm588_vm0, %v56_v42, %v347_v44  ;;  %v635_v47 = vsel %vm588_vm0, %v55_v43, %v345_v45  ;;  %v866_v44 = vld [vmem:[%s1763_s0 + $0x3a8] sm:$0xff]  ;;  %v865_v45 = vld [vmem:[%s1763_s0 + $0x3a0] sm:$0xff] }
  0xd2   :  { %779 = vst [vmem:[#allocation2 + $0x2f0] sm:$0xff] %v636_v46  ;;  %777 = vst [vmem:[#allocation2 + $0x2e0] sm:$0xff] %v635_v47 }
  0xd4   :  { %v447_v50 = vpop.permute.xlu1 %446  ;;  %v445_v51 = vpop.permute.xlu0 %444 }
  0xd5   :  { %v638_v52 = vsel %vm588_vm0, %v846_v48, %v447_v50  ;;  %v637_v53 = vsel %vm588_vm0, %v845_v49, %v445_v51  ;;  %v868_v50 = vld [vmem:[%s1763_s0 + $0x3b8] sm:$0xff]  ;;  %v867_v51 = vld [vmem:[%s1763_s0 + $0x3b0] sm:$0xff] }
  0xd6   :  { %688 = vst [vmem:[#allocation2 + $0x18] sm:$0xff] %v638_v52  ;;  %686 = vst [vmem:[#allocation2 + $0x8] sm:$0xff] %v637_v53 }
  0xd8   :  { %v451_v56 = vpop.permute.xlu1 %450  ;;  %v449_v57 = vpop.permute.xlu0 %448 }
  0xd9   :  { %v640_v58 = vsel %vm588_vm0, %v848_v54, %v451_v56  ;;  %v639_v59 = vsel %vm588_vm0, %v847_v55, %v449_v57  ;;  %v870_v56 = vld [vmem:[%s1763_s0 + $0x3c8] sm:$0xff]  ;;  %v869_v57 = vld [vmem:[%s1763_s0 + $0x3c0] sm:$0xff] }
  0xda   :  { %692 = vst [vmem:[#allocation2 + $0x38] sm:$0xff] %v640_v58  ;;  %690 = vst [vmem:[#allocation2 + $0x28] sm:$0xff] %v639_v59 }
  0xdc   :  { %v455_v62 = vpop.permute.xlu1 %454  ;;  %v453_v63 = vpop.permute.xlu0 %452 }
  0xdd   :  { %v642_v0 = vsel %vm588_vm0, %v850_v60, %v455_v62  ;;  %v641_v1 = vsel %vm588_vm0, %v849_v61, %v453_v63  ;;  %v872_v62 = vld [vmem:[%s1763_s0 + $0x3d8] sm:$0xff]  ;;  %v871_v63 = vld [vmem:[%s1763_s0 + $0x3d0] sm:$0xff] }
  0xde   :  { %696 = vst [vmem:[#allocation2 + $0x58] sm:$0xff] %v642_v0  ;;  %694 = vst [vmem:[#allocation2 + $0x48] sm:$0xff] %v641_v1 }
  0xe0   :  { %v459_v4 = vpop.permute.xlu1 %458  ;;  %v457_v5 = vpop.permute.xlu0 %456 }
  0xe1   :  { %v644_v6 = vsel %vm588_vm0, %v852_v2, %v459_v4  ;;  %v643_v7 = vsel %vm588_vm0, %v851_v3, %v457_v5  ;;  %v874_v4 = vld [vmem:[%s1763_s0 + $0x3e8] sm:$0xff]  ;;  %v873_v5 = vld [vmem:[%s1763_s0 + $0x3e0] sm:$0xff] }
  0xe2   :  { %700 = vst [vmem:[#allocation2 + $0x78] sm:$0xff] %v644_v6  ;;  %698 = vst [vmem:[#allocation2 + $0x68] sm:$0xff] %v643_v7 }
  0xe4   :  { %v463_v10 = vpop.permute.xlu1 %462  ;;  %v461_v11 = vpop.permute.xlu0 %460 }
  0xe5   :  { %v646_v12 = vsel %vm588_vm0, %v854_v8, %v463_v10  ;;  %v645_v13 = vsel %vm588_vm0, %v853_v9, %v461_v11  ;;  %v876_v10 = vld [vmem:[%s1763_s0 + $0x3f8] sm:$0xff]  ;;  %v875_v11 = vld [vmem:[%s1763_s0 + $0x3f0] sm:$0xff] }
  0xe6   :  { %704 = vst [vmem:[#allocation2 + $0x98] sm:$0xff] %v646_v12  ;;  %702 = vst [vmem:[#allocation2 + $0x88] sm:$0xff] %v645_v13 }
  0xe8   :  { %v467_v16 = vpop.permute.xlu1 %466  ;;  %v465_v17 = vpop.permute.xlu0 %464 }
  0xe9   :  { %v648_v18 = vsel %vm588_vm0, %v856_v14, %v467_v16  ;;  %v647_v19 = vsel %vm588_vm0, %v855_v15, %v465_v17  ;;  %v878_v16 = vld [vmem:[%s1763_s0 + $0x408] sm:$0xff]  ;;  %v877_v17 = vld [vmem:[%s1763_s0 + $0x400] sm:$0xff] }
  0xea   :  { %708 = vst [vmem:[#allocation2 + $0xb8] sm:$0xff] %v648_v18  ;;  %706 = vst [vmem:[#allocation2 + $0xa8] sm:$0xff] %v647_v19 }
  0xec   :  { %v471_v22 = vpop.permute.xlu1 %470  ;;  %v469_v23 = vpop.permute.xlu0 %468 }
  0xed   :  { %v650_v24 = vsel %vm588_vm0, %v858_v20, %v471_v22  ;;  %v649_v25 = vsel %vm588_vm0, %v857_v21, %v469_v23  ;;  %v880_v22 = vld [vmem:[%s1763_s0 + $0x418] sm:$0xff]  ;;  %v879_v23 = vld [vmem:[%s1763_s0 + $0x410] sm:$0xff] }
  0xee   :  { %712 = vst [vmem:[#allocation2 + $0xd8] sm:$0xff] %v650_v24  ;;  %710 = vst [vmem:[#allocation2 + $0xc8] sm:$0xff] %v649_v25 }
  0xf0   :  { %v475_v28 = vpop.permute.xlu1 %474  ;;  %v473_v29 = vpop.permute.xlu0 %472 }
  0xf1   :  { %v652_v30 = vsel %vm588_vm0, %v860_v26, %v475_v28  ;;  %v651_v31 = vsel %vm588_vm0, %v859_v27, %v473_v29  ;;  %v882_v28 = vld [vmem:[%s1763_s0 + $0x428] sm:$0xff]  ;;  %v881_v29 = vld [vmem:[%s1763_s0 + $0x420] sm:$0xff] }
  0xf2   :  { %716 = vst [vmem:[#allocation2 + $0xf8] sm:$0xff] %v652_v30  ;;  %714 = vst [vmem:[#allocation2 + $0xe8] sm:$0xff] %v651_v31 }
  0xf4   :  { %v479_v34 = vpop.permute.xlu1 %478  ;;  %v477_v35 = vpop.permute.xlu0 %476 }
  0xf5   :  { %v654_v36 = vsel %vm588_vm0, %v862_v32, %v479_v34  ;;  %v653_v37 = vsel %vm588_vm0, %v861_v33, %v477_v35  ;;  %v884_v34 = vld [vmem:[%s1763_s0 + $0x438] sm:$0xff]  ;;  %v883_v35 = vld [vmem:[%s1763_s0 + $0x430] sm:$0xff] }
  0xf6   :  { %720 = vst [vmem:[#allocation2 + $0x118] sm:$0xff] %v654_v36  ;;  %718 = vst [vmem:[#allocation2 + $0x108] sm:$0xff] %v653_v37 }
  0xf8   :  { %v483_v40 = vpop.permute.xlu1 %482  ;;  %v481_v41 = vpop.permute.xlu0 %480 }
  0xf9   :  { %v656_v42 = vsel %vm588_vm0, %v864_v38, %v483_v40  ;;  %v655_v43 = vsel %vm588_vm0, %v863_v39, %v481_v41  ;;  %v886_v40 = vld [vmem:[%s1763_s0 + $0x448] sm:$0xff]  ;;  %v885_v41 = vld [vmem:[%s1763_s0 + $0x440] sm:$0xff] }
  0xfa   :  { %724 = vst [vmem:[#allocation2 + $0x138] sm:$0xff] %v656_v42  ;;  %722 = vst [vmem:[#allocation2 + $0x128] sm:$0xff] %v655_v43 }
  0xfc   :  { %v487_v46 = vpop.permute.xlu1 %486  ;;  %v485_v47 = vpop.permute.xlu0 %484 }
  0xfd   :  { %v658_v48 = vsel %vm588_vm0, %v866_v44, %v487_v46  ;;  %v657_v49 = vsel %vm588_vm0, %v865_v45, %v485_v47  ;;  %v888_v46 = vld [vmem:[%s1763_s0 + $0x458] sm:$0xff]  ;;  %v887_v47 = vld [vmem:[%s1763_s0 + $0x450] sm:$0xff] }
  0xfe   :  { %728 = vst [vmem:[#allocation2 + $0x158] sm:$0xff] %v658_v48  ;;  %726 = vst [vmem:[#allocation2 + $0x148] sm:$0xff] %v657_v49 }
 0x100   :  { %v491_v52 = vpop.permute.xlu1 %490  ;;  %v489_v53 = vpop.permute.xlu0 %488 }
 0x101   :  { %v660_v54 = vsel %vm588_vm0, %v868_v50, %v491_v52  ;;  %v659_v55 = vsel %vm588_vm0, %v867_v51, %v489_v53  ;;  %v890_v52 = vld [vmem:[%s1763_s0 + $0x468] sm:$0xff]  ;;  %v889_v53 = vld [vmem:[%s1763_s0 + $0x460] sm:$0xff] }
 0x102   :  { %732 = vst [vmem:[#allocation2 + $0x178] sm:$0xff] %v660_v54  ;;  %730 = vst [vmem:[#allocation2 + $0x168] sm:$0xff] %v659_v55 }
 0x104   :  { %v495_v58 = vpop.permute.xlu1 %494  ;;  %v493_v59 = vpop.permute.xlu0 %492 }
 0x105   :  { %v662_v60 = vsel %vm588_vm0, %v870_v56, %v495_v58  ;;  %v661_v61 = vsel %vm588_vm0, %v869_v57, %v493_v59  ;;  %v892_v58 = vld [vmem:[%s1763_s0 + $0x478] sm:$0xff]  ;;  %v891_v59 = vld [vmem:[%s1763_s0 + $0x470] sm:$0xff] }
 0x106   :  { %736 = vst [vmem:[#allocation2 + $0x198] sm:$0xff] %v662_v60  ;;  %734 = vst [vmem:[#allocation2 + $0x188] sm:$0xff] %v661_v61 }
 0x108   :  { %v499_v0 = vpop.permute.xlu1 %498  ;;  %v497_v1 = vpop.permute.xlu0 %496 }
 0x109   :  { %v664_v2 = vsel %vm588_vm0, %v872_v62, %v499_v0  ;;  %v663_v3 = vsel %vm588_vm0, %v871_v63, %v497_v1 }
 0x10a   :  { %740 = vst [vmem:[#allocation2 + $0x1b8] sm:$0xff] %v664_v2  ;;  %738 = vst [vmem:[#allocation2 + $0x1a8] sm:$0xff] %v663_v3 }
 0x10c   :  { %v503_v6 = vpop.permute.xlu1 %502  ;;  %v501_v7 = vpop.permute.xlu0 %500 }
 0x10d   :  { %v666_v8 = vsel %vm588_vm0, %v874_v4, %v503_v6  ;;  %v665_v9 = vsel %vm588_vm0, %v873_v5, %v501_v7 }
 0x10e   :  { %744 = vst [vmem:[#allocation2 + $0x1d8] sm:$0xff] %v666_v8  ;;  %742 = vst [vmem:[#allocation2 + $0x1c8] sm:$0xff] %v665_v9 }
 0x110   :  { %v507_v12 = vpop.permute.xlu1 %506  ;;  %v505_v13 = vpop.permute.xlu0 %504 }
 0x111   :  { %v668_v14 = vsel %vm588_vm0, %v876_v10, %v507_v12  ;;  %v667_v15 = vsel %vm588_vm0, %v875_v11, %v505_v13 }
 0x112   :  { %748 = vst [vmem:[#allocation2 + $0x1f8] sm:$0xff] %v668_v14  ;;  %746 = vst [vmem:[#allocation2 + $0x1e8] sm:$0xff] %v667_v15 }
 0x114   :  { %v511_v18 = vpop.permute.xlu1 %510  ;;  %v509_v19 = vpop.permute.xlu0 %508 }
 0x115   :  { %v670_v20 = vsel %vm588_vm0, %v878_v16, %v511_v18  ;;  %v669_v21 = vsel %vm588_vm0, %v877_v17, %v509_v19 }
 0x116   :  { %752 = vst [vmem:[#allocation2 + $0x218] sm:$0xff] %v670_v20  ;;  %750 = vst [vmem:[#allocation2 + $0x208] sm:$0xff] %v669_v21 }
 0x118   :  { %v515_v24 = vpop.permute.xlu1 %514  ;;  %v513_v25 = vpop.permute.xlu0 %512 }
 0x119   :  { %v672_v26 = vsel %vm588_vm0, %v880_v22, %v515_v24  ;;  %v671_v27 = vsel %vm588_vm0, %v879_v23, %v513_v25 }
 0x11a   :  { %756 = vst [vmem:[#allocation2 + $0x238] sm:$0xff] %v672_v26  ;;  %754 = vst [vmem:[#allocation2 + $0x228] sm:$0xff] %v671_v27 }
 0x11c   :  { %v519_v30 = vpop.permute.xlu1 %518  ;;  %v517_v31 = vpop.permute.xlu0 %516 }
 0x11d   :  { %v674_v32 = vsel %vm588_vm0, %v882_v28, %v519_v30  ;;  %v673_v33 = vsel %vm588_vm0, %v881_v29, %v517_v31 }
 0x11e   :  { %760 = vst [vmem:[#allocation2 + $0x258] sm:$0xff] %v674_v32  ;;  %758 = vst [vmem:[#allocation2 + $0x248] sm:$0xff] %v673_v33 }
 0x120   :  { %v523_v36 = vpop.permute.xlu1 %522  ;;  %v521_v37 = vpop.permute.xlu0 %520 }
 0x121   :  { %v676_v38 = vsel %vm588_vm0, %v884_v34, %v523_v36  ;;  %v675_v39 = vsel %vm588_vm0, %v883_v35, %v521_v37 }
 0x122   :  { %764 = vst [vmem:[#allocation2 + $0x278] sm:$0xff] %v676_v38  ;;  %762 = vst [vmem:[#allocation2 + $0x268] sm:$0xff] %v675_v39 }
 0x124   :  { %v527_v42 = vpop.permute.xlu1 %526  ;;  %v525_v43 = vpop.permute.xlu0 %524 }
 0x125   :  { %v678_v44 = vsel %vm588_vm0, %v886_v40, %v527_v42  ;;  %v677_v45 = vsel %vm588_vm0, %v885_v41, %v525_v43 }
 0x126   :  { %768 = vst [vmem:[#allocation2 + $0x298] sm:$0xff] %v678_v44  ;;  %766 = vst [vmem:[#allocation2 + $0x288] sm:$0xff] %v677_v45 }
 0x128   :  { %v531_v48 = vpop.permute.xlu1 %530  ;;  %v529_v49 = vpop.permute.xlu0 %528 }
 0x129   :  { %v680_v50 = vsel %vm588_vm0, %v888_v46, %v531_v48  ;;  %v679_v51 = vsel %vm588_vm0, %v887_v47, %v529_v49 }
 0x12a   :  { %772 = vst [vmem:[#allocation2 + $0x2b8] sm:$0xff] %v680_v50  ;;  %770 = vst [vmem:[#allocation2 + $0x2a8] sm:$0xff] %v679_v51 }
 0x12c   :  { %v535_v54 = vpop.permute.xlu1 %534  ;;  %v533_v55 = vpop.permute.xlu0 %532 }
 0x12d   :  { %v682_v56 = vsel %vm588_vm0, %v890_v52, %v535_v54  ;;  %v681_v57 = vsel %vm588_vm0, %v889_v53, %v533_v55 }
 0x12e   :  { %776 = vst [vmem:[#allocation2 + $0x2d8] sm:$0xff] %v682_v56  ;;  %774 = vst [vmem:[#allocation2 + $0x2c8] sm:$0xff] %v681_v57 }
 0x130   :  { %v539_v60 = vpop.permute.xlu1 %538  ;;  %v537_v61 = vpop.permute.xlu0 %536 }
 0x131   :  { %v684_v62 = vsel %vm588_vm0, %v892_v58, %v539_v60  ;;  %v683_v63 = vsel %vm588_vm0, %v891_v59, %v537_v61 }
 0x132   :  { %780 = vst [vmem:[#allocation2 + $0x2f8] sm:$0xff] %v684_v62  ;;  %778 = vst [vmem:[#allocation2 + $0x2e8] sm:$0xff] %v683_v63 }
 0x133   :  { %956 = shalt.err (!%p953_p4)
}
 0x134   :  { %s957_s0 = scalar_lea.hbm %s1764_s1, 12288 }
 0x135   :  { %p958_p5 = scmp.ne.s32.totalorder %s1764_s1, %s957_s0  ;;  %p961_p6 = scmp.lt.u32.totalorder %s957_s0, %s1764_s1 }
 0x137   :  { %p963_p7 = pnand %p961_p6, %p958_p5 }
 0x139   :  { %966 = shalt.err (!%p963_p7)
}
 0x13a   :  { %s971_s2 = smov 256   ;;  %s972_s3 = smov 16  }
 0x13b   :  { %792 = dma.vmem_to_hbm [thread:$0]  %s787_s20, 12288, %s1764_s1, [#allocation3], %s971_s2, %s971_s2, %s972_s3  }
 0x13c   :  { %967 = dma.done.wait [#allocation3], 12288  }
 0x13d   :  { %968 = vsyncadd [#allocation3], 4294955008 }
 0x13e   :  { %796 = vsyncpa [#allocation3], 1 }

</bundles_post_ra>
